<compile_context>
chip_gen: v6e
topology: v6e:2x2x1
jax: 0.10.0
libtpu: 0.0.40
codegen_flags: <defaults>
</compile_context>

<pallas_src>
import math

import jax
import jax.numpy as jnp
from jax import lax
from jax.experimental import pallas as pl
from jax.experimental.pallas import tpu as pltpu


# -----------------------------------------------------------------------------
# Kernel bodies
# -----------------------------------------------------------------------------
def _attn_body(q_ref, k_ref, v_ref, wqt_ref, bq_ref, vs_ref):
    """One (batch, q-tile) block of attention.

    q_ref  : (1, tq, H)  raw query rows
    k_ref  : (1, Lk, H)  raw key rows        (ks gate folded into wqt)
    v_ref  : (1, Lk, H)  raw value rows      (vs gate applied to mix)
    wqt_ref: (H, H)      pre-transposed, pre-scaled query weight
                         wqt = ((qs*ks/sqrt(dim)) * W_q).T
    bq_ref : (1, H)      pre-scaled query bias
    vs_ref : (1, H)      value gate (Overparam output)
    """
    q_in = q_ref[0]                                            # (tq, H)
    k_in = k_ref[0]                                            # (Lk, H)
    v_in = v_ref[0]                                            # (Lk, H)

    # Fused query projection (gates + 1/sqrt(dim) already folded in on the host).
    q = jnp.dot(q_in, wqt_ref[...],
                preferred_element_type=jnp.float32) + bq_ref[...]

    # scores = q @ k^T : contract the last dim of both operands directly so no
    # transposed copy of k is materialized; bf16 MXU inputs, f32 accumulation.
    scores = lax.dot_general(
        q.astype(jnp.bfloat16), k_in.astype(jnp.bfloat16),
        (((1,), (1,)), ((), ())),
        preferred_element_type=jnp.float32)                    # (tq, Lk)

    # Softmax over keys; statistics stay in f32.
    m = jnp.max(scores, axis=-1, keepdims=True)
    e = jnp.exp(scores - m)
    inv = pl.reciprocal(jnp.sum(e, axis=-1, keepdims=True), approx=True)
    w = e * inv                                                # (tq, Lk)

    mix = jnp.dot(w.astype(jnp.bfloat16), v_in.astype(jnp.bfloat16),
                  preferred_element_type=jnp.float32)          # (tq, H)
    # vs gate applied post-matmul: touches tq*H elements instead of Lk*H.
    mix = mix * vs_ref[...]
    return mix, w


def _attention_kernel(q_ref, k_ref, v_ref, wqt_ref, bq_ref, vs_ref,
                      mix_ref, focus_ref):
    mix, w = _attn_body(q_ref, k_ref, v_ref, wqt_ref, bq_ref, vs_ref)
    mix_ref[0] = mix.astype(mix_ref.dtype)
    focus_ref[0] = w.astype(focus_ref.dtype)


def _attention_kernel_nofocus(q_ref, k_ref, v_ref, wqt_ref, bq_ref, vs_ref,
                              mix_ref):
    mix, _ = _attn_body(q_ref, k_ref, v_ref, wqt_ref, bq_ref, vs_ref)
    mix_ref[0] = mix.astype(mix_ref.dtype)


# -----------------------------------------------------------------------------
# Tiling / VMEM sizing
# -----------------------------------------------------------------------------
_TILE_VMEM_BUDGET = 24 * 1024 * 1024   # per-step working-set target (all gens)
_VMEM_LIMIT_CAP = 56 * 1024 * 1024     # leave headroom under v7x's 64 MiB VMEM


def _vmem_bytes(tq, Lk, H, need_weights):
    """Rough per-grid-step VMEM estimate (f32, double-buffered streamed blocks)."""
    blocks = tq * H + 2 * Lk * H + tq * H + (tq * Lk if need_weights else 0)
    params = H * H + 2 * H
    interm = 3 * tq * Lk + 2 * tq * H          # scores / e / w, q, mix (f32)
    return 4 * (2 * blocks + params + interm)


def _choose_q_tile(Lq, Lk, H, need_weights):
    # 256 rows fills the v6e/v7x MXU M dim; 128 fills v5e's.
    for tq in (256, 128):
        if Lq % tq == 0 and _vmem_bytes(tq, Lk, H, need_weights) <= _TILE_VMEM_BUDGET:
            return tq
    return Lq   # small or irregular sequences: single block per batch element


# -----------------------------------------------------------------------------
# Wrapper
# -----------------------------------------------------------------------------
def attention_forward(query, key, value, params, *, need_weights=True):
    """query/key/value: (L, B, H) float32 (batch_first=False).

    Returns (mix, focus): mix (Lq, B, H); focus (B, 1, Lq, Lk) or None if
    need_weights=False (skips the O(B*Lq*Lk) HBM writeback).
    """
    H = query.shape[-1]
    f32 = jnp.float32

    # ---- host-side gate preprocessing (tiny, O(H^2)) ------------------------
    qs = jax.nn.sigmoid(params["qs"]).reshape(H).astype(f32)
    ks = jax.nn.sigmoid(params["ks"]).reshape(H).astype(f32)
    vs0 = jax.nn.sigmoid(params["vs"]).reshape(1, H).astype(f32)
    # Overparam: c, f = Linear(H, 2H)(vs).split(H); vs = sigmoid(f) * tanh(c)
    h = vs0 @ params["vq_w"].T + params["vq_b"]
    c, f = h[..., :H], h[..., H:]
    vs = (jax.nn.sigmoid(f) * jnp.tanh(c)).reshape(1, H).astype(f32)

    # Fold qs, ks and the 1/sqrt(dim) softmax scale into the query projection:
    #   scores = (qs*(xW^T+b)) @ (ks*k)^T / sqrt(d) = (x W'^T + b') @ k^T
    # with W'[o,:] = g[o]*W[o,:], b'[o] = g[o]*b[o], g = qs*ks/sqrt(d).
    g = qs * ks * (1.0 / math.sqrt(H))                       # heads==1 -> dim==H
    wqt = (params["q_w"].astype(f32) * g[:, None]).T         # (H_in, H_out), pre-T
    bq = (params["q_b"].astype(f32) * g).reshape(1, H)

    # batch_first=False -> (B, L, H) for the kernel
    qv = jnp.transpose(query, (1, 0, 2)).astype(f32)
    kv = jnp.transpose(key, (1, 0, 2)).astype(f32)
    vv = jnp.transpose(value, (1, 0, 2)).astype(f32)

    B, Lq, _ = qv.shape
    Lk = kv.shape[1]

    tq = _choose_q_tile(Lq, Lk, H, need_weights)
    n_q = Lq // tq
    vmem_limit = int(min(_VMEM_LIMIT_CAP,
                         max(32 * 1024 * 1024,
                             2 * _vmem_bytes(tq, Lk, H, need_weights))))

    grid = (B, n_q)
    in_specs = [
        pl.BlockSpec((1, tq, H), lambda b, i: (b, i, 0)),   # query tile
        pl.BlockSpec((1, Lk, H), lambda b, i: (b, 0, 0)),   # keys (full, per batch)
        pl.BlockSpec((1, Lk, H), lambda b, i: (b, 0, 0)),   # values (full, per batch)
        pl.BlockSpec((H, H),     lambda b, i: (0, 0)),      # fused W_q^T (resident)
        pl.BlockSpec((1, H),     lambda b, i: (0, 0)),      # fused b_q
        pl.BlockSpec((1, H),     lambda b, i: (0, 0)),      # vs gate
    ]
    compiler_params = pltpu.CompilerParams(
        dimension_semantics=("parallel", "parallel"),
        vmem_limit_bytes=vmem_limit)

    if need_weights:
        mix, focus = pl.pallas_call(
            _attention_kernel,
            out_shape=(jax.ShapeDtypeStruct((B, Lq, H), f32),
                       jax.ShapeDtypeStruct((B, Lq, Lk), f32)),
            grid=grid,
            in_specs=in_specs,
            out_specs=(pl.BlockSpec((1, tq, H), lambda b, i: (b, i, 0)),
                       pl.BlockSpec((1, tq, Lk), lambda b, i: (b, i, 0))),
            compiler_params=compiler_params,
        )(qv, kv, vv, wqt, bq, vs)
        focus_out = focus.reshape(B, 1, Lq, Lk)             # heads == 1
    else:
        mix = pl.pallas_call(
            _attention_kernel_nofocus,
            out_shape=jax.ShapeDtypeStruct((B, Lq, H), f32),
            grid=grid,
            in_specs=in_specs,
            out_specs=pl.BlockSpec((1, tq, H), lambda b, i: (b, i, 0)),
            compiler_params=compiler_params,
        )(qv, kv, vv, wqt, bq, vs)
        focus_out = None

    mix_out = jnp.transpose(mix, (1, 0, 2))                 # back to (Lq, B, H)
    return mix_out, focus_out


# -----------------------------------------------------------------------------
# Pure-JAX reference (exact f32) and parameter init matching the torch module
# -----------------------------------------------------------------------------
def _reference_forward(query, key, value, params):
    nhid = query.shape[-1]
    qs = jax.nn.sigmoid(params["qs"])
    ks = jax.nn.sigmoid(params["ks"])
    vs0 = jax.nn.sigmoid(params["vs"])
    h = vs0 @ params["vq_w"].T + params["vq_b"]
    c, f = h[..., :nhid], h[..., nhid:]
    vs = jax.nn.sigmoid(f) * jnp.tanh(c)

    query = query @ params["q_w"].T + params["q_b"]
    q, k, v = qs * query, ks * key, vs * value
    q, k, v = (jnp.transpose(t, (1, 0, 2)) for t in (q, k, v))  # (B, L, H)
    B, Lq, H = q.shape
    Lk = k.shape[1]
    q = q.reshape(B, Lq, 1, H).transpose(0, 2, 1, 3)
    k = k.reshape(B, Lk, 1, H).transpose(0, 2, 1, 3)
    v = v.reshape(B, Lk, 1, H).transpose(0, 2, 1, 3)
    scores = jnp.einsum("bhqd,bhkd->bhqk", q, k) / math.sqrt(H)
    w = jax.nn.softmax(scores, axis=-1)
    mix = jnp.einsum("bhqk,bhkd->bhqd", w, v)
    mix = mix.transpose(0, 2, 1, 3).reshape(B, Lq, H)
    return jnp.transpose(mix, (1, 0, 2)), w


def make_params(nhid, key):
    k1, k2, k3, k4 = jax.random.split(key, 4)
    bound_q = 1.0 / math.sqrt(nhid)
    bound_vq = 1.0 / math.sqrt(nhid)
    return {
        # module __init__: qs/ks/vs start at zeros
        "qs": jnp.zeros((1, 1, nhid), jnp.float32),
        "ks": jnp.zeros((1, 1, nhid), jnp.float32),
        "vs": jnp.zeros((1, 1, nhid), jnp.float32),
        # self.q = nn.Linear(nhid, nhid)
        "q_w": jax.random.uniform(k1, (nhid, nhid), jnp.float32, -bound_q, bound_q),
        "q_b": jax.random.uniform(k2, (nhid,), jnp.float32, -bound_q, bound_q),
        # self.vq.l1 = nn.Linear(nhid, 2*nhid)
        "vq_w": jax.random.uniform(k3, (2 * nhid, nhid), jnp.float32, -bound_vq, bound_vq),
        "vq_b": jax.random.uniform(k4, (2 * nhid,), jnp.float32, -bound_vq, bound_vq),
    }


if __name__ == "__main__":
    root = jax.random.PRNGKey(0)

    # Small module-like shapes, plus a larger one exercising the q-tiled path
    # (grid=(B, Lq//256)) and lane-dense (multiple-of-128) focus blocks.
    for (seq, batch, nhid) in [(8, 2, 32), (512, 2, 128)]:
        kp, kq, kk, kv, root = jax.random.split(root, 5)
        params = make_params(nhid, kp)
        query = jax.random.normal(kq, (seq, batch, nhid), jnp.float32)
        key_ = jax.random.normal(kk, (seq, batch, nhid), jnp.float32)
        value = jax.random.normal(kv, (seq, batch, nhid), jnp.float32)

        mix, focus = attention_forward(query, key_, value, params)
        jax.block_until_ready((mix, focus))

        mix_ref, focus_ref = _reference_forward(query, key_, value, params)
        # bf16 MXU inputs + approx reciprocal -> loosened tolerance vs f32 ref.
        assert jnp.allclose(mix, mix_ref, atol=2e-2, rtol=2e-2), \
            f"mix mismatch at {(seq, batch, nhid)}"
        assert jnp.allclose(focus, focus_ref, atol=2e-2, rtol=2e-2), \
            f"focus mismatch at {(seq, batch, nhid)}"

        # Focus-free fast path (skips the O(B*Lq*Lk) HBM writeback).
        mix_nf, focus_nf = attention_forward(query, key_, value, params,
                                             need_weights=False)
        jax.block_until_ready(mix_nf)
        assert focus_nf is None
        assert jnp.allclose(mix_nf, mix_ref, atol=2e-2, rtol=2e-2), \
            f"mix (no-focus) mismatch at {(seq, batch, nhid)}"

    print("KERNEL_OK")
</pallas_src>

<mosaic_0001>
module attributes {stable_mosaic.version = 11 : i64} {
  func.func @_attention_kernel(%arg0: i32, %arg1: i32, %arg2: memref<1x8x32xf32, #tpu.memory_space<vmem>>, %arg3: memref<1x8x32xf32, #tpu.memory_space<vmem>>, %arg4: memref<1x8x32xf32, #tpu.memory_space<vmem>>, %arg5: memref<32x32xf32, #tpu.memory_space<vmem>>, %arg6: memref<1x32xf32, #tpu.memory_space<vmem>>, %arg7: memref<1x32xf32, #tpu.memory_space<vmem>>, %arg8: memref<1x8x32xf32, #tpu.memory_space<vmem>>, %arg9: memref<1x8x8xf32, #tpu.memory_space<vmem>>) attributes {dimension_semantics = [#tpu.dimension_semantics<parallel>, #tpu.dimension_semantics<parallel>], iteration_bounds = array<i64: 2, 1>, scalar_prefetch = 0 : i64, scratch_operands = 0 : i64, tpu.core_type = #tpu.core_type<tc>, window_params = [{transform_indices = @transform_0, window_bounds = array<i64: 1, 8, 32>}, {transform_indices = @transform_1, window_bounds = array<i64: 1, 8, 32>}, {transform_indices = @transform_2, window_bounds = array<i64: 1, 8, 32>}, {pipeline_mode = #tpu.pipeline_mode<synchronous>, transform_indices = @transform_3, window_bounds = array<i64: 32, 32>}, {pipeline_mode = #tpu.pipeline_mode<synchronous>, transform_indices = @transform_4, window_bounds = array<i64: 1, 32>}, {pipeline_mode = #tpu.pipeline_mode<synchronous>, transform_indices = @transform_5, window_bounds = array<i64: 1, 32>}, {transform_indices = @transform_6, window_bounds = array<i64: 1, 8, 32>}, {transform_indices = @transform_7, window_bounds = array<i64: 1, 8, 8>}]} {
    %c0 = arith.constant 0 : index
    %c0_0 = arith.constant 0 : index
    %c0_1 = arith.constant 0 : index
    %0 = vector.load %arg2[%c0, %c0_0, %c0_1] : memref<1x8x32xf32, #tpu.memory_space<vmem>>, vector<1x8x32xf32>
    %1 = vector.shape_cast %0 : vector<1x8x32xf32> to vector<8x32xf32>
    %c0_2 = arith.constant 0 : index
    %c0_3 = arith.constant 0 : index
    %c0_4 = arith.constant 0 : index
    %2 = vector.load %arg3[%c0_2, %c0_3, %c0_4] : memref<1x8x32xf32, #tpu.memory_space<vmem>>, vector<1x8x32xf32>
    %3 = vector.shape_cast %2 : vector<1x8x32xf32> to vector<8x32xf32>
    %c0_5 = arith.constant 0 : index
    %c0_6 = arith.constant 0 : index
    %c0_7 = arith.constant 0 : index
    %4 = vector.load %arg4[%c0_5, %c0_6, %c0_7] : memref<1x8x32xf32, #tpu.memory_space<vmem>>, vector<1x8x32xf32>
    %5 = vector.shape_cast %4 : vector<1x8x32xf32> to vector<8x32xf32>
    %c0_8 = arith.constant 0 : index
    %c0_9 = arith.constant 0 : index
    %6 = vector.load %arg5[%c0_8, %c0_9] : memref<32x32xf32, #tpu.memory_space<vmem>>, vector<32x32xf32>
    %cst = arith.constant dense<0.000000e+00> : vector<8x32xf32>
    %7 = tpu.matmul %1, %6, %cst {dimension_numbers = #tpu.dot_dimension_numbers<[1], [0], [0], [1], [0, 0, 1, 1], [], []>} : vector<8x32xf32>, vector<32x32xf32>, vector<8x32xf32> -> vector<8x32xf32>
    %c0_10 = arith.constant 0 : index
    %c0_11 = arith.constant 0 : index
    %8 = vector.load %arg6[%c0_10, %c0_11] : memref<1x32xf32, #tpu.memory_space<vmem>>, vector<1x32xf32>
    %9 = vector.broadcast %8 : vector<1x32xf32> to vector<8x32xf32>
    %10 = arith.addf %7, %9 : vector<8x32xf32>
    %11 = arith.truncf %10 : vector<8x32xf32> to vector<8x32xbf16>
    %12 = arith.truncf %3 : vector<8x32xf32> to vector<8x32xbf16>
    %cst_12 = arith.constant dense<0.000000e+00> : vector<8x8xf32>
    %13 = tpu.matmul %11, %12, %cst_12 {dimension_numbers = #tpu.dot_dimension_numbers<[1], [1], [0], [0], [0, 0, 1, 0], [], []>} : vector<8x32xbf16>, vector<8x32xbf16>, vector<8x8xf32> -> vector<8x8xf32>
    %cst_13 = arith.constant dense<0xFF800000> : vector<8xf32>
    %14 = vector.multi_reduction <maximumf>, %13, %cst_13 [1] : vector<8x8xf32> to vector<8xf32>
    %15 = vector.shape_cast %14 : vector<8xf32> to vector<8x1xf32>
    %16 = vector.broadcast %15 : vector<8x1xf32> to vector<8x8xf32>
    %17 = arith.subf %13, %16 : vector<8x8xf32>
    %18 = math.exp %17 : vector<8x8xf32>
    %cst_14 = arith.constant dense<0.000000e+00> : vector<8xf32>
    %19 = vector.multi_reduction <add>, %18, %cst_14 [1] : vector<8x8xf32> to vector<8xf32>
    %20 = vector.shape_cast %19 : vector<8xf32> to vector<8x1xf32>
    %21 = tpu.reciprocal %20 {approx = true} : vector<8x1xf32> -> vector<8x1xf32>
    %22 = vector.broadcast %21 : vector<8x1xf32> to vector<8x8xf32>
    %23 = arith.mulf %18, %22 : vector<8x8xf32>
    %24 = arith.truncf %23 : vector<8x8xf32> to vector<8x8xbf16>
    %25 = arith.truncf %5 : vector<8x32xf32> to vector<8x32xbf16>
    %cst_15 = arith.constant dense<0.000000e+00> : vector<8x32xf32>
    %26 = tpu.matmul %24, %25, %cst_15 {dimension_numbers = #tpu.dot_dimension_numbers<[1], [0], [0], [1], [0, 0, 1, 1], [], []>} : vector<8x8xbf16>, vector<8x32xbf16>, vector<8x32xf32> -> vector<8x32xf32>
    %c0_16 = arith.constant 0 : index
    %c0_17 = arith.constant 0 : index
    %27 = vector.load %arg7[%c0_16, %c0_17] : memref<1x32xf32, #tpu.memory_space<vmem>>, vector<1x32xf32>
    %28 = vector.broadcast %27 : vector<1x32xf32> to vector<8x32xf32>
    %29 = arith.mulf %26, %28 : vector<8x32xf32>
    %c0_18 = arith.constant 0 : index
    %c0_19 = arith.constant 0 : index
    %c0_20 = arith.constant 0 : index
    %30 = vector.load %arg8[%c0_18, %c0_19, %c0_20] : memref<1x8x32xf32, #tpu.memory_space<vmem>>, vector<1x8x32xf32>
    %31 = vector.shape_cast %30 : vector<1x8x32xf32> to vector<8x32xf32>
    %32 = vector.shape_cast %29 : vector<8x32xf32> to vector<1x8x32xf32>
    tpu.vector_store %arg8[%c0_18, %c0_19, %c0_20], %32 {strides = array<i32>} : memref<1x8x32xf32, #tpu.memory_space<vmem>>, vector<1x8x32xf32>,
    %c0_21 = arith.constant 0 : index
    %c0_22 = arith.constant 0 : index
    %c0_23 = arith.constant 0 : index
    %33 = vector.load %arg9[%c0_21, %c0_22, %c0_23] : memref<1x8x8xf32, #tpu.memory_space<vmem>>, vector<1x8x8xf32>
    %34 = vector.shape_cast %33 : vector<1x8x8xf32> to vector<8x8xf32>
    %35 = vector.shape_cast %23 : vector<8x8xf32> to vector<1x8x8xf32>
    tpu.vector_store %arg9[%c0_21, %c0_22, %c0_23], %35 {strides = array<i32>} : memref<1x8x8xf32, #tpu.memory_space<vmem>>, vector<1x8x8xf32>,
    return
  }
  func.func @transform_0(%arg0: i32, %arg1: i32) -> (i32, i32, i32) {
    %c0_i32 = arith.constant 0 : i32
    %c0_i32_0 = arith.constant 0 : i32
    return %arg0, %arg1, %c0_i32 : i32, i32, i32
  }
  func.func @transform_1(%arg0: i32, %arg1: i32) -> (i32, i32, i32) {
    %c0_i32 = arith.constant 0 : i32
    %c0_i32_0 = arith.constant 0 : i32
    %c0_i32_1 = arith.constant 0 : i32
    return %arg0, %c0_i32, %c0_i32_0 : i32, i32, i32
  }
  func.func @transform_2(%arg0: i32, %arg1: i32) -> (i32, i32, i32) {
    %c0_i32 = arith.constant 0 : i32
    %c0_i32_0 = arith.constant 0 : i32
    %c0_i32_1 = arith.constant 0 : i32
    return %arg0, %c0_i32, %c0_i32_0 : i32, i32, i32
  }
  func.func @transform_3(%arg0: i32, %arg1: i32) -> (i32, i32) {
    %c0_i32 = arith.constant 0 : i32
    %c0_i32_0 = arith.constant 0 : i32
    %c0_i32_1 = arith.constant 0 : i32
    return %c0_i32, %c0_i32_0 : i32, i32
  }
  func.func @transform_4(%arg0: i32, %arg1: i32) -> (i32, i32) {
    %c0_i32 = arith.constant 0 : i32
    %c0_i32_0 = arith.constant 0 : i32
    %c0_i32_1 = arith.constant 0 : i32
    return %c0_i32, %c0_i32_0 : i32, i32
  }
  func.func @transform_5(%arg0: i32, %arg1: i32) -> (i32, i32) {
    %c0_i32 = arith.constant 0 : i32
    %c0_i32_0 = arith.constant 0 : i32
    %c0_i32_1 = arith.constant 0 : i32
    return %c0_i32, %c0_i32_0 : i32, i32
  }
  func.func @transform_6(%arg0: i32, %arg1: i32) -> (i32, i32, i32) {
    %c0_i32 = arith.constant 0 : i32
    %c0_i32_0 = arith.constant 0 : i32
    return %arg0, %arg1, %c0_i32 : i32, i32, i32
  }
  func.func @transform_7(%arg0: i32, %arg1: i32) -> (i32, i32, i32) {
    %c0_i32 = arith.constant 0 : i32
    %c0_i32_0 = arith.constant 0 : i32
    return %arg0, %arg1, %c0_i32 : i32, i32, i32
  }
}

</mosaic_0001>

<bundles_post_ra>
// kernel: tpu_custom_call.1
= control target key start
LH: loop header
LB: loop body
LE: loop exit
PB: predicated region body
PF: predicated region fallthrough
CT: control target
= control target key end

     0   :  { %s1528_s0 = inlined_call_operand.hbm [shape: f32[2,8,32], index: 0, kind: input, shape index: {}]   ;;  %s1529_s1 = inlined_call_operand.hbm [shape: f32[2,8,32], index: 1, kind: input, shape index: {}]   ;;  %s1530_s2 = inlined_call_operand.hbm [shape: f32[2,8,32], index: 2, kind: input, shape index: {}]   ;;  %s1531_s3 = inlined_call_operand.hbm [shape: f32[32,32], index: 3, kind: input, shape index: {}]   ;;  %s1532_s4 = inlined_call_operand.vmem [shape: f32[1,32], index: 4, kind: input, shape index: {}]   ;;  %s1533_s5 = inlined_call_operand.vmem [shape: f32[1,32], index: 5, kind: input, shape index: {}]   ;;  %s1534_s6 = inlined_call_operand.hbm [shape: f32[2,8,32], index: 6, kind: output, shape index: {0}]   ;;  %s1535_s7 = inlined_call_operand.hbm [shape: f32[2,8,8], index: 7, kind: output, shape index: {1}]  }
   0x1   :  { %1545 = sst [smem:[#allocation24_spill]] %s1529_s1 }
   0x2   :  { %13 = vsyncpa [#allocation3], 0 }
   0x3   :  { %15 = vsyncpa [#allocation3 + $0x1], 0 }
   0x4   :  { %16 = vsyncpa [#allocation6], 0 }
   0x5   :  { %18 = vsyncpa [#allocation6 + $0x1], 0 }
   0x6   :  { %19 = vsyncpa [#allocation9], 0 }
   0x7   :  { %20 = vsyncpa [#allocation4], 0 }
   0x8   :  { %22 = vsyncpa [#allocation4 + $0x1], 0 }
   0x9   :  { %23 = vsyncpa [#allocation12], 0 }
   0xa   :  { %25 = vsyncpa [#allocation12 + $0x1], 0  ;;  %s1255_s24 = smov 0   ;;  %s1257_s25 = smov 0  }
   0xb   :  { %s1259_s26 = smov 0   ;;  %s1261_s27 = smov 0  }
   0xc   :  { %s1263_s28 = smov 0   ;;  %s1265_s29 = smov 0  }
   0xd LB: > { %1546 = sst [smem:[#allocation18_spill]] %s1183_s24  ;;  %s43_s30 = sadd.s32 1, %s1199_s28  ;;  %s1203_s29 = sphi %s1265_s29, %s31_s29   ;;  %s1199_s28 = sphi %s1263_s28, %s1571_s28   ;;  %s1195_s27 = sphi %s1261_s27, %s1570_s27   ;;  %s1191_s26 = sphi %s1259_s26, %s1574_s26   ;;  %s1187_s25 = sphi %s1257_s25, %s1573_s25   ;;  %s1183_s24 = sphi %s1255_s24, %s1572_s24  }
   0xe   : > { %1547 = sst [smem:[#allocation19_spill]] %s1199_s28  ;;  %s52_s8 = sadd.s32 1, %s1191_s26 }
   0xf   : > { %1548 = sst [smem:[#allocation20_spill]] %s1203_s29  ;;  %p45_p0 = scmp.ge.s32.totalorder %s43_s30, 2 }
  0x10   : > { %p59_p1 = scmp.ne.s32.totalorder %s1191_s26, %s1187_s25  ;;  %p60_p2 = scmp.eq.s32.totalorder %s1203_s29, 0 }
  0x11   : > { %s1576_s30 = smov (%p45_p0, %s43_s30), 0  ;;  %p915_p5 = scmp.lt.s32.totalorder %s1203_s29, 2 }
  0x12   : > { %1549 = sst [smem:[#allocation21_spill]] %s1576_s30  ;;  %p61_p4 = por %p60_p2, %p59_p1 }
  0x13   : > { %s47_s9 = ssub.s32 %s1199_s28, %s1576_s30  ;;  %s1536_s10 = sand.u32 1, %s1191_s26  }
  0x14   : > { %p50_p6 = scmp.eq.s32.totalorder %s47_s9, 0  ;;  %s1302_s11 = sshll.u32 %s1536_s10, 3 }
  0x15   : > { %s1305_s12 = sshll.u32 %s1199_s28, 7  ;;  %p1307_p7 = pnand %p915_p5, %p61_p4 }
  0x16   : > { %s1312_s14 = scalar_select %p50_p6, %s1191_s26, %s52_s8  }
  0x17   : > { %s298_s15 = sand.u32 1, %s1203_s29   ;;  %s1552_s1 = sld [smem:[#allocation24_spill]] }
  0x18   : > { %1551 = sst [smem:[#allocation22_spill]] %s1312_s14  ;;  %s302_s19 = scalar_lea.vmem [#allocation5], %s1302_s11 }
  0x19   : > { %s309_s20 = sshll.u32 %s302_s19, 4  ;;  %s1320_s21 = scalar_lea.sflag [#allocation6], %s298_s15  ;;  %s310_s20 = int_to_ptr.vmem [resolvable:$true] %s309_s20 }
  0x1a   : > { %p1539_p8 = pneg %p1307_p7  ;;  %s988_s22 = scalar_lea.vmem %s310_s20, 128 }
  0x1b   : > { %p989_p9 = scmp.ne.s32.totalorder %s310_s20, %s988_s22  ;;  %s1205_s23 = smov [#allocation5]  }
  0x1c   : > { %s993_s8 = sshll.u32 %s1205_s23, 4  ;;  %s994_s8 = int_to_ptr.vmem [resolvable:$false] %s993_s8 }
  0x1d   : > { %s307_s18 = scalar_lea.hbm %s1552_s1, %s1305_s12  ;;  %p991_p10 = pnand %p989_p9, %p1539_p8 }
  0x1e   : > { %s995_s9 = scalar_lea.vmem %s994_s8, 256  ;;  %p996_p12 = scmp.lt.s32.totalorder %s310_s20, %s994_s8 }
  0x1f   : > { %p992_p11 = pneg %p991_p10  ;;  %p997_p13 = scmp.lt.s32.totalorder %s995_s9, %s988_s22 }
  0x21   : > { %p998_p0 = por %p997_p13, %p996_p12 }
  0x23   : > { %p999_p2 = pnand %p998_p0, %p992_p11 }
  0x25   : > { %1002 = shalt.err (!%p999_p2)
}
  0x26   : > { %903 = dma.hbm_to_vmem [thread:$0]  (!%p1307_p7), %s307_s18, 128, %s310_s20, %s1320_s21  }
  0x27   : > { %s1331_s15 = sadd.s32 4294967295, %s1203_s29   ;;  %s819_s16 = sadd.s32 4294967294, %s1203_s29  }
  0x28   : > { %p65_p4 = scmp.ne.s32.totalorder %s1187_s25, %s1183_s24  ;;  %p1538_p5 = scmp.eq.s32.totalorder %s1331_s15, 0 }
  0x29   : > { %p206_p6 = scmp.eq.s32.totalorder %s1331_s15, 1  ;;  %p212_p9 = scmp.eq.s32.totalorder %s819_s16, 1 }
  0x2a   : > { %p820_p10 = scmp.ge.s32.totalorder %s1203_s29, 1  ;;  %p1341_p11 = por %p1538_p5, %p65_p4 }
  0x2b   : > { %p1348_p12 = por %p206_p6, %p59_p1  ;;  %p1352_p13 = por %p212_p9, %p65_p4 }
  0x2c   : > { %p247_p0 = scmp.lt.s32.totalorder %s1203_s29, 3  ;;  %s1206_s22 = smov [#allocation8]  }
  0x2d   : > { %s1555_s19 = scalar_select %p1352_p13, 1, 0 }
  0x2e   : > { %p1357_p2 = pnand %p820_p10, %p247_p0  ;;  %s259_s23 = sshll.u32 %s1206_s22, 4  ;;  %s260_s23 = int_to_ptr.vmem [resolvable:$true] %s259_s23 }
  0x2f   : > { %1556 = sst [smem:[#allocation23_spill]] %s1555_s19  ;;  %s283_s1 = scalar_lea.vmem [#allocation2], %s1302_s11 }
  0x30   : > { %p893_p3 = pneg %p1357_p2  ;;  %s291_s30 = sshll.u32 %s283_s1, 4  ;;  %s1374_s30 = int_to_ptr.vmem [resolvable:$true] %s291_s30 }
  0x31   : > { %s1014_s22 = scalar_lea.vmem %s260_s23, 512  ;;  %p1022_p0 = scmp.lt.s32.totalorder %s260_s23, %s260_s23 }
  0x32   : > { %p1365_p1 = pnand %p893_p3, %p1538_p5  ;;  %p1015_p6 = scmp.ne.s32.totalorder %s260_s23, %s1014_s22 }
  0x33   : > { %p1023_p3 = scmp.lt.s32.totalorder %s1014_s22, %s1014_s22 }
  0x34   : > { %p1005_p4 = pneg %p1365_p1 }
  0x35   : > { %p1024_p5 = por %p1023_p3, %p1022_p0 }
  0x36   : > { %p1017_p9 = pnand %p1015_p6, %p1005_p4 }
  0x38   : > { %p1018_p10 = pneg %p1017_p9 }
  0x3a   : > { %p1025_p8 = pnand %p1024_p5, %p1018_p10 }
  0x3c   : > { %1028 = shalt.err (!%p1025_p8)
}
  0x3d   : > { %s1207_s28 = smov 128   ;;  %s1208_s1 = smov 8  }
  0x3e   : > { %896 = dma.hbm_to_vmem [thread:$0]  (!%p1365_p1), %s1531_s3, 512, %s260_s23, [#allocation9], %s1207_s28, %s1207_s28, %s1208_s1  }
  0x3f   : > { %s1559_s10 = sand.u32 1, %s1191_s26   ;;  %s1042_s29 = scalar_lea.vmem %s1374_s30, 128 }
  0x40   : > { %s280_s14 = scalar_lea.sflag [#allocation3], %s1559_s10  ;;  %p1043_p4 = scmp.ne.s32.totalorder %s1374_s30, %s1042_s29 }
  0x41   : > { %p1560_p5 = pneg %p1307_p7  ;;  %s1209_s22 = smov [#allocation2]  }
  0x42   : > { %s1047_s19 = sshll.u32 %s1209_s22, 4  ;;  %s1048_s19 = int_to_ptr.vmem [resolvable:$false] %s1047_s19 }
  0x43   : > { %p1045_p8 = pnand %p1043_p4, %p1560_p5  ;;  %s1049_s24 = scalar_lea.vmem %s1048_s19, 256 }
  0x44   : > { %p1050_p9 = scmp.lt.s32.totalorder %s1374_s30, %s1048_s19  ;;  %p1051_p10 = scmp.lt.s32.totalorder %s1049_s24, %s1042_s29 }
  0x45   : > { %p1046_p6 = pneg %p1045_p8 }
  0x46   : > { %p1052_p0 = por %p1051_p10, %p1050_p9 }
  0x48   : > { %p1053_p3 = pnand %p1052_p0, %p1046_p6 }
  0x4a   : > { %1056 = shalt.err (!%p1053_p3)
}
  0x4b   : > { %s1561_s23 = scalar_lea.hbm %s1528_s0, %s1305_s12  ;;  %s325_s19 = scalar_lea.hbm %s1530_s2, %s1305_s12 }
  0x4c   : > { %900 = dma.hbm_to_vmem [thread:$0]  (!%p1307_p7), %s1561_s23, 128, %s1374_s30, %s280_s14  }
  0x4d   : > { %s320_s24 = scalar_lea.vmem [#allocation7], %s1302_s11  ;;  %p1562_p4 = pmov %p1560_p5 }
  0x4e   : > { %s327_s29 = sshll.u32 %s320_s24, 4  ;;  %s1210_s16 = smov [#allocation7]   ;;  %s328_s29 = int_to_ptr.vmem [resolvable:$true] %s327_s29 }
  0x4f   : > { %s1070_s9 = scalar_lea.vmem %s328_s29, 128  ;;  %s1075_s22 = sshll.u32 %s1210_s16, 4  ;;  %s1076_s22 = int_to_ptr.vmem [resolvable:$false] %s1075_s22 }
  0x50   : > { %p1071_p1 = scmp.ne.s32.totalorder %s328_s29, %s1070_s9  ;;  %s1077_s28 = scalar_lea.vmem %s1076_s22, 256 }
  0x51   : > { %p1078_p6 = scmp.lt.s32.totalorder %s328_s29, %s1076_s22  ;;  %p1079_p9 = scmp.lt.s32.totalorder %s1077_s28, %s1070_s9 }
  0x52   : > { %p1073_p5 = pnand %p1071_p1, %p1562_p4 }
  0x53   : > { %p1080_p10 = por %p1079_p9, %p1078_p6 }
  0x54   : > { %p1074_p8 = pneg %p1073_p5 }
  0x56   : > { %p1081_p0 = pnand %p1080_p10, %p1074_p8 }
  0x58   : > { %1084 = shalt.err (!%p1081_p0)
}
  0x59   : > { %906 = dma.hbm_to_vmem [thread:$0]  (!%p1307_p7), %s325_s19, 128, %s328_s29, %s1320_s21  }
  0x5a   : > { %336 = sbr.rel (%p1357_p2) target bundleno = 1025 (0x401), region = 44  ;;  %s1413_s30 = sand.u32 (!%p1357_p2), 1, %s1187_s25  }
  0x5b   : > { %s1416_s11 = sshll.u32 (!%p1357_p2), %s1413_s30, 3  ;;  %s339_s12 = scalar_lea.sflag (!%p1357_p2), [#allocation3], %s1413_s30 }
  0x5c   : > { %s342_s14 = scalar_lea.vmem (!%p1357_p2), [#allocation2], %s1416_s11 }
  0x5f   : > { %1162 = dma.done.wait (%p1341_p11), %s339_s12, 128  }
  0x60   : > { %1164 = vsyncadd (%p1341_p11), %s339_s12, 4294967168  ;;  %s347_s13 = sand.u32 1, %s1331_s15   ;;  %s351_s20 = scalar_lea.vmem [#allocation5], %s1416_s11 }
  0x61   : > { %s348_s21 = scalar_lea.sflag [#allocation6], %s347_s13 }
  0x62   : > { %1166 = dma.done.wait (%p1341_p11), %s348_s21, 256  }
  0x63   : > { %1168 = vsyncadd (%p1341_p11), %s348_s21, 4294967040  ;;  %s360_s10 = scalar_lea.vmem [#allocation7], %s1416_s11  ;;  %p1563_p7 = scmp.eq.s32.totalorder %s1331_s15, 0 }
  0x65   : > { %1170 = dma.done.wait (%p1563_p7), [#allocation9], 512   ;;  %p1564_p2 = pmov %p1563_p7 }
  0x66   : > { %v1211_v0 = vmov 0.0   ;;  %vm1212_vm0 = vmmov 0   ;;  %v417_v1 = vld [vmem:[#allocation8 + $0x18] sm:$0xff]  ;;  %v416_v2 = vld [vmem:[#allocation8 + $0x10] sm:$0xff]  ;;  %v412_v3 = vld [vmem:[%s351_s20] sm:$0xff]  ;;  %vm425_vm1 = vcmask 261120  }
  0x67   : > { %1172 = vsyncadd (%p1564_p2), [#allocation9], 4294966784  ;;  %856 = vmatprep.subr.mxu0 %v1211_v0  ;;  %864 = vmatprep.mubr.msk.f32.mxu0 %vm1212_vm0, %v1211_v0  ;;  %v415_v4 = vld [vmem:[#allocation8 + $0x8] sm:$0xff]  ;;  %v500_v5 = vpack.c.bf16 %v412_v3, %v412_v3  ;;  %v414_v6 = vld [vmem:[#allocation8] sm:$0xff]  ;;  %vm547_vm2 = vcmask 64512   ;;  %vm564_vm3 = vcmask 1043456  }
  0x68   : > { %867 = vmatprep.subr.bf16.mxu1 %v1211_v0  ;;  %869 = vmatprep.mubr.msk.bf16.mxu1 %vm1212_vm0, %v1211_v0  ;;  %v411_v8 = vld [vmem:[%s342_s14] sm:$0xff]  ;;  %s409_s23 = scalar_lea.vmem [#allocation11], %s1416_s11  ;;  %s843_s8 = sshll.u32 %s1195_s27, 7 }
  0x69   : > { %857 = vmatpush3.msra.mxu0 %v417_v1  ;;  %v505_v7 = vsel %vm425_vm1, %v500_v5, 0  ;;  %v836_v9 = vld [vmem:[%s1532_s4] ss:$0 sm:$0xff]  ;;  %s650_s24 = scalar_lea.hbm %s1535_s7, %s843_s8  ;;  %s652_s29 = sshll.u32 %s409_s23, 4  ;;  %s653_s29 = int_to_ptr.vmem [resolvable:$true] %s652_s29 }
  0x6a   : > { %858 = vmatprep.subr.mxu0 %v1211_v0  ;;  %868 = vmatpush3.bf16.xpose.msra.mxu1 %v505_v7  ;;  %v413_v24 = vld [vmem:[%s360_s10] sm:$0xff]  ;;  %s624_s9 = scalar_lea.sflag [#allocation12], %s1413_s30  ;;  %s1085_s16 = scalar_lea.vmem %s653_s29, 128 }
  0x6b   : > { %859 = vmatpush3.msra.mxu0 %v416_v2  ;;  %v560_v25 = vpack.c.bf16 %v413_v24, %v413_v24  ;;  %p1086_p11 = scmp.ne.s32.totalorder %s653_s29, %s1085_s16  ;;  %s1213_s22 = smov [#allocation11]  }
  0x6c   : > { %860 = vmatprep.subr.mxu0 %v1211_v0  ;;  %s1089_s28 = sshll.u32 %s1213_s22, 4  ;;  %s1090_s28 = int_to_ptr.vmem [resolvable:$false] %s1089_s28 }
  0x6d   : > { %861 = vmatpush3.msra.mxu0 %v415_v4  ;;  %v566_v26 = vsel %vm564_vm3, %v560_v25, 0  ;;  %p1087_p3 = pnand %p1086_p11, %p1348_p12  ;;  %s1091_s12 = scalar_lea.vmem %s1090_s28, 256 }
  0x6e   : > { %862 = vmatprep.subr.mxu0 %v1211_v0  ;;  %p1092_p4 = scmp.lt.s32.totalorder %s653_s29, %s1090_s28  ;;  %p1093_p5 = scmp.lt.s32.totalorder %s1091_s12, %s1085_s16 }
  0x6f   : > { %863 = vmatpush3.msra.mxu0 %v414_v6  ;;  %p1088_p1 = pneg %p1087_p3 }
  0x70   : > { %865 = vmatmul.mubr.msk.f32.vlgmr.msra.gmra.mxu0 %vm425_vm1, %v411_v8  ;;  %873 = vmatprep.subr.bf16.mxu0 %v1211_v0  ;;  %p1094_p8 = por %p1093_p5, %p1092_p4 }
  0x71   : > { %875 = vmatprep.mubr.msk.bf16.mxu0 %vm1212_vm0, %v1211_v0  ;;  %874 = vmatpush3.bf16.msra.mxu0 %v566_v26 }
  0x72   : > { %p1095_p6 = pnand %p1094_p8, %p1088_p1 }
 0x130   : > { %v495_v10 = vpop.f32.mrf.mxu0 }
 0x131   : > { %v496_v11 = vadd.f32 %v836_v9, %v495_v10 }
 0x132   : > { %v866_v12 = vpop.f32.mrf.mxu0 }
 0x133   : > { %v499_v13 = vpack.c.bf16 %v496_v11, %v496_v11 }
 0x135   : > { %870 = vmatmul.mubr.msk.bf16.vlgmr.msra.gmra.mxu1 %vm425_vm1, %v499_v13 }
 0x1f5   : > { %v541_v14 = vpop.f32.mrf.mxu1 }
 0x1f6   : > { %v548_v15 = vsel %vm547_vm2, %v541_v14, -inf }
 0x1f7   : > { %549 = vmax.xlane.f32.xlu0 %v548_v15  ;;  %v871_v16 = vpop.f32.mrf.mxu1 }
 0x1f9   : > { %v544_v17 = vpop.f32.mrf.mxu1 }
 0x1fb   : > { %v872_v18 = vpop.f32.mrf.mxu1 }
 0x280   : > { %v550_v19 = vpop.xlane.xlu0 %549 }
 0x281   : > { %v551_v20 = vsub.f32 %v541_v14, %v550_v19 }
 0x283   : > { %v552_v21 = vmul.f32 1.442695, %v551_v20 }
 0x285   : > { %971 = vpow2.f32 %v552_v21 }
 0x292   : > { %v972_v22 = vpop.eup %971 }
 0x293   : > { %v554_v23 = vsel %vm547_vm2, %v972_v22, 0.0 }
 0x294   : > { %555 = vadd.xlane.f32.xlu0 %v554_v23 }
 0x31d   : > { %v556_v27 = vpop.xlane.xlu0 %555 }
 0x31e   : > { %973 = vrcp.f32 %v556_v27 }
 0x32b   : > { %v974_v28 = vpop.eup %973 }
 0x32c   : > { %v558_v29 = vmul.f32 %v974_v28, %v972_v22 }
 0x32e   : > { %v559_v30 = vpack.c.bf16 %v558_v29, %v558_v29  ;;  %617 = vst.msk [vmem:[%s409_s23] sm:$0xff] %vm547_vm2, %v558_v29 }
 0x330   : > { %876 = vmatmul.mubr.msk.bf16.vlgmr.msra.gmra.mxu0 %vm547_vm2, %v559_v30 }
 0x331   : > { %1098 = shalt.err (!%p1095_p6)
}
 0x332   : > { %s1099_s14 = scalar_lea.hbm %s650_s24, 128  ;;  %s1103_s20 = scalar_lea.hbm %s1535_s7, 256 }
 0x333   : > { %p1100_p9 = scmp.ne.s32.totalorder %s650_s24, %s1099_s14  ;;  %p1104_p7 = scmp.lt.s32.totalorder %s650_s24, %s1535_s7 }
 0x334   : > { %p1105_p2 = scmp.lt.s32.totalorder %s1103_s20, %s1099_s14 }
 0x335   : > { %p1101_p10 = pnand %p1100_p9, %p1348_p12 }
 0x336   : > { %p1106_p11 = por %p1105_p2, %p1104_p7 }
 0x337   : > { %p1102_p0 = pneg %p1101_p10 }
 0x339   : > { %p1107_p3 = pnand %p1106_p11, %p1102_p0 }
 0x33b   : > { %1110 = shalt.err (!%p1107_p3)
}
 0x33c   : > { %890 = dma.vmem_to_hbm [thread:$0]  (%p1348_p12), %s653_s29, 128, %s650_s24, %s624_s9   ;;  %v840_v31 = vld [vmem:[%s1533_s5] ss:$0 sm:$0xff] }
 0x33d   : > { %s402_s1 = scalar_lea.vmem [#allocation10], %s1416_s11  ;;  %s1479_s28 = scalar_lea.hbm %s1534_s6, %s843_s8 }
 0x33e   : > { %s638_s19 = sshll.u32 %s402_s1, 4  ;;  %s619_s24 = scalar_lea.sflag [#allocation4], %s1413_s30  ;;  %s1481_s19 = int_to_ptr.vmem [resolvable:$true] %s638_s19 }
 0x33f   : > { %s1111_s11 = scalar_lea.vmem %s1481_s19, 128  ;;  %s1214_s27 = smov [#allocation10]  }
 0x340   : > { %p1112_p1 = scmp.ne.s32.totalorder %s1481_s19, %s1111_s11  ;;  %s1115_s29 = sshll.u32 %s1214_s27, 4  ;;  %s1116_s29 = int_to_ptr.vmem [resolvable:$false] %s1115_s29 }
 0x341   : > { %s1117_s8 = scalar_lea.vmem %s1116_s29, 256  ;;  %p1118_p8 = scmp.lt.s32.totalorder %s1481_s19, %s1116_s29 }
 0x342   : > { %p1113_p4 = pnand %p1112_p1, %p1348_p12  ;;  %p1119_p6 = scmp.lt.s32.totalorder %s1117_s8, %s1111_s11 }
 0x344   : > { %p1114_p5 = pneg %p1113_p4  ;;  %p1120_p9 = por %p1119_p6, %p1118_p8 }
 0x346   : > { %p1121_p10 = pnand %p1120_p9, %p1114_p5 }
 0x3f0   : > { %v602_v32 = vpop.f32.mrf.mxu0 }
 0x3f1   : > { %v615_v33 = vmul.f32 %v840_v31, %v602_v32 }
 0x3f2   : > { %v877_v34 = vpop.f32.mrf.mxu0 }
 0x3f3   : > { %616 = vst.msk [vmem:[%s402_s1] sm:$0xff] %vm425_vm1, %v615_v33 }
 0x3f4   : > { %v605_v35 = vpop.f32.mrf.mxu0 }
 0x3f5   : > { %1124 = shalt.err (!%p1121_p10)
}
 0x3f6   : > { %s1125_s9 = scalar_lea.hbm %s1479_s28, 128  ;;  %s1129_s14 = scalar_lea.hbm %s1534_s6, 256 }
 0x3f7   : > { %p1126_p0 = scmp.ne.s32.totalorder %s1479_s28, %s1125_s9  ;;  %p1130_p11 = scmp.lt.s32.totalorder %s1479_s28, %s1534_s6 }
 0x3f8   : > { %p1131_p3 = scmp.lt.s32.totalorder %s1129_s14, %s1125_s9 }
 0x3f9   : > { %p1127_p7 = pnand %p1126_p0, %p1348_p12 }
 0x3fa   : > { %p1132_p1 = por %p1131_p3, %p1130_p11 }
 0x3fb   : > { %p1128_p2 = pneg %p1127_p7 }
 0x3fd   : > { %p1133_p4 = pnand %p1132_p1, %p1128_p2 }
 0x3ff   : > { %1136 = shalt.err (!%p1133_p4)
}
 0x400   : > { %889 = dma.vmem_to_hbm [thread:$0]  (%p1348_p12), %s1481_s19, 128, %s1479_s28, %s619_s24   ;;  %v878_v36 = vpop.f32.mrf.mxu0 }
 0x401 PF: > { %s1565_s20 = sld [smem:[#allocation18_spill]] }
 0x402   : > { %s1567_s15 = sld [smem:[#allocation20_spill]] }
 0x407   : > { %s664_s17 = sand.u32 1, %s1565_s20  }
 0x408   : > { %p1568_p5 = scmp.ge.s32.totalorder %s1567_s15, 2  ;;  %s665_s23 = scalar_lea.sflag [#allocation4], %s664_s17 }
 0x40a   : > { %p908_p8 = pnand %p1568_p5, %p1352_p13 }
 0x40c   : > { %p909_p6 = pneg %p908_p8 }
 0x40e   : > { %1174 = dma.done.wait (%p909_p6), %s665_s23, 128  }
 0x40f   : > { %1176 = vsyncadd (%p909_p6), %s665_s23, 4294967168  ;;  %s674_s1 = scalar_lea.sflag [#allocation12], %s664_s17 }
 0x410   : > { %1178 = dma.done.wait (%p909_p6), %s674_s1, 128  }
 0x411   : > { %1180 = vsyncadd (%p909_p6), %s674_s1, 4294967168  ;;  %s31_s29 = sadd.s32 1, %s1567_s15   ;;  %s1569_s18 = sld [smem:[#allocation22_spill]] }
 0x412   : > { %p28_p9 = scmp.ge.s32.totalorder %s31_s29, 4   ;;  %s1570_s27 = sld [smem:[#allocation19_spill]] }
 0x413   : > { %s1571_s28 = sld [smem:[#allocation21_spill]]  ;;  %s1572_s24 = smov %s1187_s25 }
 0x414   : > { %s1573_s25 = smov %s1191_s26  ;;  %30 = sbr.rel (!%p28_p9) target bundleno = 13 (0xd), region = 134 }
 0x417   : > { %s1574_s26 = smov %s1569_s18 }
 0x419   :  { %679 = vsyncpa [#allocation3], 1 }
 0x41a   :  { %681 = vsyncpa [#allocation3 + $0x1], 1 }
 0x41b   :  { %682 = vsyncpa [#allocation6], 1 }
 0x41c   :  { %684 = vsyncpa [#allocation6 + $0x1], 1 }
 0x41d   :  { %685 = vsyncpa [#allocation9], 1 }
 0x41e   :  { %686 = vsyncpa [#allocation4], 1 }
 0x41f   :  { %688 = vsyncpa [#allocation4 + $0x1], 1 }
 0x420   :  { %689 = vsyncpa [#allocation12], 1 }
 0x421   :  { %691 = vsyncpa [#allocation12 + $0x1], 1 }

</bundles_post_ra>
